<compile_context>
chip_gen: v6e
topology: v6e:2x2x1
jax: 0.10.0
libtpu: 0.0.40
codegen_flags: <defaults>
</compile_context>

<pallas_src>
import jax
import jax.numpy as jnp
from jax.experimental import pallas as pl
from jax.experimental.pallas import tpu as pltpu


_TARGET_BLOCK_BYTES = 4 * 1024 * 1024     # ~4 MiB per x / out block
_VMEM_LIMIT_BYTES = 48 * 1024 * 1024      # 2 arrays x 2 bufs x 4 MiB ~= 16 MiB used;
                                          # 48 MiB cap leaves headroom on v7x (64 MiB)


def _affine_kernel(x_ref, scale_ref, bias_ref, o_ref):
    # out = x * scale + bias, computed in f32 (params are f32), cast to out dtype.
    x = x_ref[...].astype(jnp.float32)
    o_ref[...] = (x * scale_ref[...] + bias_ref[...]).astype(o_ref.dtype)


def _sublane_unit(dtype):
    # Sub-32-bit dtypes pack along sublanes: 8 (f32) / 16 (bf16) / 32 (int8/fp8).
    itemsize = jnp.dtype(dtype).itemsize
    return max(8, 8 * (4 // max(1, itemsize)))


def _pick_tile(dim, unit, max_tile):
    """Largest multiple of `unit` dividing `dim`, <= max_tile.

    If `dim` fits the cap, the full dim is used (always a legal block shape).
    If no divisor <= max_tile exists, returns the capped tile itself; the
    caller uses a pl.cdiv grid so the ragged last block is handled by Pallas
    instead of silently exceeding the VMEM budget with a full-dim block.
    """
    if dim <= max_tile:
        return dim
    cap = max(unit, (max_tile // unit) * unit)
    t = cap
    while t >= unit:
        if dim % t == 0:
            return t
        t -= unit
    return cap


def _run_affine(x2, scale2, bias2, *, params_per_row):
    """Elementwise affine over a 2-D slab x2:(R, L).

    scale2/bias2: (R, 1) float32 when params_per_row else (1, L) float32.
    """
    R, L = x2.shape
    itemsize = jnp.dtype(x2.dtype).itemsize
    row_unit = _sublane_unit(x2.dtype)

    # Lane tile first (lane-dense output is the biggest measured lever), then
    # derive the row tile from the ~4 MiB per-block byte budget.
    max_lane = max(128, (_TARGET_BLOCK_BYTES // (row_unit * itemsize)) // 128 * 128)
    lane_tile = _pick_tile(L, 128, max_lane)
    row_budget = max(row_unit,
                     (_TARGET_BLOCK_BYTES // max(1, lane_tile * itemsize))
                     // row_unit * row_unit)
    row_tile = _pick_tile(R, row_unit, row_budget)

    grid_r = pl.cdiv(R, row_tile)
    grid_l = pl.cdiv(L, lane_tile)

    # v7x: guarantee >=2 blocks on one parallel axis so both TensorCores (and
    # their DMA engines) get work.  Prefer splitting rows to keep lanes wide.
    if grid_r * grid_l == 1:
        if R >= 2 * row_unit:
            row_tile = max(row_unit, pl.cdiv(pl.cdiv(R, 2), row_unit) * row_unit)
            grid_r = pl.cdiv(R, row_tile)
        elif L >= 2 * 128:
            lane_tile = max(128, pl.cdiv(pl.cdiv(L, 2), 128) * 128)
            grid_l = pl.cdiv(L, lane_tile)

    if params_per_row:
        p_block = (row_tile, 1)
        p_map = lambda r, l: (r, 0)   # constant across inner (lane) axis -> resident
    else:
        p_block = (1, lane_tile)
        p_map = lambda r, l: (0, l)

    return pl.pallas_call(
        _affine_kernel,
        out_shape=jax.ShapeDtypeStruct((R, L), x2.dtype),
        grid_spec=pltpu.PrefetchScalarGridSpec(
            num_scalar_prefetch=0,
            grid=(grid_r, grid_l),
            in_specs=[
                pl.BlockSpec((row_tile, lane_tile), lambda r, l: (r, l)),
                pl.BlockSpec(p_block, p_map),
                pl.BlockSpec(p_block, p_map),
            ],
            out_specs=pl.BlockSpec((row_tile, lane_tile), lambda r, l: (r, l)),
        ),
        compiler_params=pltpu.CompilerParams(
            dimension_semantics=("parallel", "parallel"),
            vmem_limit_bytes=_VMEM_LIMIT_BYTES),
        cost_estimate=pl.CostEstimate(
            flops=2 * R * L, transcendentals=0,
            bytes_accessed=2 * R * L * itemsize),
    )(x2, scale2, bias2)


def actnorm_forward(x, loc, scale, logdet=False):
    """ActNorm forward.

    x     : (N, C, H, W) or (N, C)   (f32 / bf16)
    loc   : (1, C, 1, 1)   per-channel shift (PyTorch parameter shape)
    scale : (1, C, 1, 1)   per-channel scale
    """
    squeeze = (x.ndim == 2)
    N, C = x.shape[0], x.shape[1]

    # Params in f32; bias = scale*loc so the kernel is a single FMA.
    scale_f = scale.reshape(C).astype(jnp.float32)
    loc_f = loc.reshape(C).astype(jnp.float32)
    bias_f = scale_f * loc_f

    if squeeze:
        H = W = 1
        if N * C < 8 * 128:
            # Tiny (N, C): custom-call launch overhead dominates and C < 128
            # lowers to masked narrow stores; XLA's fused elementwise wins.
            h = (x.astype(jnp.float32) * scale_f[None, :]
                 + bias_f[None, :]).astype(x.dtype)
        else:
            h = _run_affine(x, scale_f.reshape(1, C), bias_f.reshape(1, C),
                            params_per_row=False)
    else:
        _, _, H, W = x.shape
        row_unit = _sublane_unit(x.dtype)
        if N * C >= row_unit or H == 1:
            # Fold (N, C) onto sublanes, H*W onto lanes.
            rows = N * C
            x2 = x.reshape(rows, H * W)
            scale_rows = jnp.tile(scale_f.reshape(C, 1), (N, 1))
            bias_rows = jnp.tile(bias_f.reshape(C, 1), (N, 1))
        else:
            # N*C below one sublane group: fold H onto the sublane axis too so
            # tiles stay sublane-dense (small-batch / few-channel configs).
            rows = N * C * H
            x2 = x.reshape(rows, W)
            scale_rows = jnp.tile(jnp.repeat(scale_f, H), N).reshape(rows, 1)
            bias_rows = jnp.tile(jnp.repeat(bias_f, H), N).reshape(rows, 1)
        h2 = _run_affine(x2, scale_rows, bias_rows, params_per_row=True)
        h = h2.reshape(N, C, H, W)

    if logdet:
        # Tiny scalar reduction over C params; plain-JAX glue, kept in float32
        # (matches torch promotion of the f32 logdet scalar against ones(N)).
        ld = (H * W) * jnp.sum(jnp.log(jnp.abs(scale_f)))
        ld = ld * jnp.ones((N,), dtype=jnp.float32)
        return h, ld
    return h


if __name__ == "__main__":
    key = jax.random.PRNGKey(0)
    k_x, k_loc, k_scale = jax.random.split(key, 3)

    N, C, H, W = 2, 4, 16, 16
    x = jax.random.normal(k_x, (N, C, H, W), dtype=jnp.float32)

    # ActNorm.__init__: loc = zeros(1,C,1,1), scale = ones(1,C,1,1).  Perturb
    # deterministically so the affine transform is non-trivial.
    loc = jnp.zeros((1, C, 1, 1), jnp.float32) + 0.1 * jax.random.normal(
        k_loc, (1, C, 1, 1), dtype=jnp.float32)
    scale = jnp.ones((1, C, 1, 1), jnp.float32) + 0.1 * jax.random.normal(
        k_scale, (1, C, 1, 1), dtype=jnp.float32)

    # --- 4-D path with logdet (ActNorm(logdet=True)) ---
    h, ld = actnorm_forward(x, loc, scale, logdet=True)
    h = jax.block_until_ready(h)
    ld = jax.block_until_ready(ld)

    h_ref = scale * (x + loc)
    ld_ref = H * W * jnp.sum(jnp.log(jnp.abs(scale))) * jnp.ones((N,), jnp.float32)
    assert h.shape == (N, C, H, W) and ld.shape == (N,)
    assert jnp.allclose(h, h_ref, atol=1e-5, rtol=1e-5)
    assert jnp.allclose(ld, ld_ref, atol=1e-5, rtol=1e-5)

    # --- bf16 4-D path (exercises dtype-aware sublane unit + fold-H layout) ---
    xb = x.astype(jnp.bfloat16)
    hb = jax.block_until_ready(actnorm_forward(xb, loc, scale, logdet=False))
    hb_ref = scale * (xb.astype(jnp.float32) + loc)
    assert hb.dtype == jnp.bfloat16
    assert jnp.allclose(hb.astype(jnp.float32), hb_ref, atol=2e-2, rtol=2e-2)

    # --- 2-D squeeze path: input (N, C) ---
    x2d = jax.random.normal(k_x, (N, C), dtype=jnp.float32)
    h2d = jax.block_until_ready(actnorm_forward(x2d, loc, scale, logdet=False))
    h2d_ref = scale.reshape(1, C) * (x2d + loc.reshape(1, C))
    assert h2d.shape == (N, C)
    assert jnp.allclose(h2d, h2d_ref, atol=1e-5, rtol=1e-5)

    # TODO(synk): data-dependent training-time initialize() (per-channel mean/std
    # on first forward, stateful `initialized` buffer) and reverse() are stateful
    # module behavior and are not part of this forward kernel.

    print("KERNEL_OK")
</pallas_src>

<mosaic_0001>
module attributes {stable_mosaic.version = 11 : i64} {
  func.func @_affine_kernel(%arg0: i32, %arg1: i32, %arg2: memref<8x128xf32, #tpu.memory_space<vmem>>, %arg3: memref<8x1xf32, #tpu.memory_space<vmem>>, %arg4: memref<8x1xf32, #tpu.memory_space<vmem>>, %arg5: memref<8x128xf32, #tpu.memory_space<vmem>>) attributes {dimension_semantics = [#tpu.dimension_semantics<parallel>, #tpu.dimension_semantics<parallel>], iteration_bounds = array<i64: 1, 2>, scalar_prefetch = 0 : i64, scratch_operands = 0 : i64, tpu.core_type = #tpu.core_type<tc>, window_params = [{transform_indices = @transform_0, window_bounds = array<i64: 8, 128>}, {transform_indices = @transform_1, window_bounds = array<i64: 8, 1>}, {transform_indices = @transform_2, window_bounds = array<i64: 8, 1>}, {transform_indices = @transform_3, window_bounds = array<i64: 8, 128>}]} {
    %c0 = arith.constant 0 : index
    %c0_0 = arith.constant 0 : index
    %0 = vector.load %arg2[%c0, %c0_0] : memref<8x128xf32, #tpu.memory_space<vmem>>, vector<8x128xf32>
    %c0_1 = arith.constant 0 : index
    %c0_2 = arith.constant 0 : index
    %1 = vector.load %arg3[%c0_1, %c0_2] : memref<8x1xf32, #tpu.memory_space<vmem>>, vector<8x1xf32>
    %2 = vector.broadcast %1 : vector<8x1xf32> to vector<8x128xf32>
    %3 = arith.mulf %0, %2 : vector<8x128xf32>
    %c0_3 = arith.constant 0 : index
    %c0_4 = arith.constant 0 : index
    %4 = vector.load %arg4[%c0_3, %c0_4] : memref<8x1xf32, #tpu.memory_space<vmem>>, vector<8x1xf32>
    %5 = vector.broadcast %4 : vector<8x1xf32> to vector<8x128xf32>
    %6 = arith.addf %3, %5 : vector<8x128xf32>
    %c0_5 = arith.constant 0 : index
    %c0_6 = arith.constant 0 : index
    %7 = vector.load %arg5[%c0_5, %c0_6] : memref<8x128xf32, #tpu.memory_space<vmem>>, vector<8x128xf32>
    tpu.vector_store %arg5[%c0_5, %c0_6], %6 {strides = array<i32>} : memref<8x128xf32, #tpu.memory_space<vmem>>, vector<8x128xf32>,
    return
  }
  func.func @transform_0(%arg0: i32, %arg1: i32) -> (i32, i32) {
    %c0_i32 = arith.constant 0 : i32
    return %arg0, %arg1 : i32, i32
  }
  func.func @transform_1(%arg0: i32, %arg1: i32) -> (i32, i32) {
    %c0_i32 = arith.constant 0 : i32
    %c0_i32_0 = arith.constant 0 : i32
    return %arg0, %c0_i32 : i32, i32
  }
  func.func @transform_2(%arg0: i32, %arg1: i32) -> (i32, i32) {
    %c0_i32 = arith.constant 0 : i32
    %c0_i32_0 = arith.constant 0 : i32
    return %arg0, %c0_i32 : i32, i32
  }
  func.func @transform_3(%arg0: i32, %arg1: i32) -> (i32, i32) {
    %c0_i32 = arith.constant 0 : i32
    return %arg0, %arg1 : i32, i32
  }
}

</mosaic_0001>

<bundles_post_ra>
// kernel: tpu_custom_call.1
= control target key start
LH: loop header
LB: loop body
LE: loop exit
PB: predicated region body
PF: predicated region fallthrough
CT: control target
= control target key end

     0   :  { %8 = vsyncpa [#allocation3], 0  ;;  %s640_s0 = inlined_call_operand.vmem [shape: f32[8,256], index: 0, kind: input, shape index: {}]   ;;  %s641_s1 = inlined_call_operand.vmem [shape: f32[8,1], index: 1, kind: input, shape index: {}]   ;;  %s642_s2 = inlined_call_operand.vmem [shape: f32[8,1], index: 2, kind: input, shape index: {}]   ;;  %s643_s3 = inlined_call_operand.hbm [shape: f32[8,256], index: 3, kind: output, shape index: {}]  }
   0x1   :  { %10 = vsyncpa [#allocation3 + $0x1], 0  ;;  %s535_s12 = smov 0   ;;  %s537_s13 = smov 0  }
   0x2   :  { %s539_s14 = smov 0   ;;  %s541_s15 = smov 0  }
   0x3   :  { %s543_s16 = smov 0   ;;  %s545_s17 = smov 0  }
   0x4 LB: > { %s365_s18 = sadd.s32 4294967295, %s511_s17   ;;  %s366_s19 = sadd.s32 4294967294, %s511_s17   ;;  %s511_s17 = sphi %s545_s17, %s16_s17   ;;  %s507_s16 = sphi %s543_s16, %s650_s16   ;;  %s503_s15 = sphi %s541_s15, %s649_s15   ;;  %s499_s14 = sphi %s539_s14, %s648_s14   ;;  %s495_s13 = sphi %s537_s13, %s647_s13   ;;  %s491_s12 = sphi %s535_s12, %s646_s12  }
   0x5   : > { %s25_s20 = sadd.s32 1, %s507_s16  ;;  %s117_s21 = sadd.s32 1, %s499_s14 }
   0x6   : > { %p26_p0 = scmp.ge.s32.totalorder %s25_s20, 2  ;;  %p127_p1 = scmp.ne.s32.totalorder %s499_s14, %s495_s13 }
   0x7   : > { %p128_p2 = scmp.eq.s32.totalorder %s365_s18, 1  ;;  %p133_p3 = scmp.ne.s32.totalorder %s495_s13, %s491_s12 }
   0x8   : > { %s652_s20 = smov (%p26_p0, %s25_s20), 0  ;;  %p134_p5 = scmp.eq.s32.totalorder %s366_s19, 1 }
   0x9   : > { %p575_p4 = por %p128_p2, %p127_p1  ;;  %s113_s23 = ssub.s32 %s507_s16, %s652_s20 }
   0xa   : > { %p371_p6 = scmp.ge.s32.totalorder %s511_s17, 1  ;;  %p115_p7 = scmp.eq.s32.totalorder %s113_s23, 0 }
   0xb   : > { %p582_p8 = por %p134_p5, %p133_p3  ;;  %p177_p9 = scmp.lt.s32.totalorder %s511_s17, 3 }
   0xc   : > { %s588_s25 = scalar_select %p115_p7, %s499_s14, %s117_s21  }
   0xd   : > { %p178_p10 = pnand %p371_p6, %p177_p9 }
   0xe   : > { %p214_p11 = scmp.lt.s32.totalorder (!%p178_p10), %s503_s15, 1  ;;  %s209_s4 = sand.u32 (!%p178_p10), 1, %s495_s13  }
   0xf   : > { %181 = sbr.rel (%p178_p10) target bundleno = 165 (0xa5), region = 32  ;;  %s372_s6 = sshll.u32 (!%p178_p10), %s209_s4, 3 }
  0x10   : > { %s375_s10 = sshll.u32 (!%p178_p10), %s503_s15, 7  ;;  %s211_s11 = scalar_lea.vmem (!%p178_p10), [#allocation2], %s372_s6 }
  0x11   : > { %s260_s18 = sshll.u32 (!%p178_p10), %s211_s11, 4  ;;  %s258_s23 = scalar_lea.hbm (!%p178_p10), %s643_s3, %s375_s10  ;;  %s261_s18 = int_to_ptr.vmem [resolvable:$true] %s260_s18 }
  0x12   : > { %s245_s26 = scalar_lea.sflag (!%p178_p10), [#allocation3], %s209_s4  ;;  %s435_s27 = scalar_lea.vmem (!%p178_p10), %s261_s18, 128 }
  0x13   : > { %p436_p12 = scmp.ne.s32.totalorder (!%p178_p10), %s261_s18, %s435_s27  ;;  %s514_s28 = smov (!%p178_p10), [#allocation2]  }
  0x14   : > { %v229_v0 = vld [vmem:[%s641_s1] sm:$0xff]  ;;  %v513_v1 = vmov 0   ;;  %s215_s30 = scalar_select %p214_p11, %s503_s15, 1 }
  0x15   : > { %434 = vset.pattern.permute.xlu0 %v513_v1  ;;  %v236_v2 = vld [vmem:[%s642_s2] sm:$0xff]  ;;  %p437_p13 = pnand %p436_p12, %p575_p4  ;;  %s439_s29 = sshll.u32 %s514_s28, 4  ;;  %s440_s29 = int_to_ptr.vmem [resolvable:$false] %s439_s29 }
  0x16   : > { %232 = vperm.xlu0 %434, %v229_v0   ;;  %s373_s5 = sshll.u32 %s215_s30, 3  ;;  %s441_s15 = scalar_lea.vmem %s440_s29, 256 }
  0x17   : > { %s219_s9 = scalar_lea.vmem %s640_s0, %s373_s5  ;;  %p438_p0 = pneg %p437_p13 }
  0x18   : > { %v228_v4 = vld [vmem:[%s219_s9] sm:$0xff]  ;;  %p442_p1 = scmp.lt.s32.totalorder %s261_s18, %s440_s29  ;;  %p443_p2 = scmp.lt.s32.totalorder %s441_s15, %s435_s27 }
  0x1a   : > { %239 = vperm.xlu0 %434, %v236_v2   ;;  %p444_p3 = por %p443_p2, %p442_p1 }
  0x1c   : > { %p445_p5 = pnand %p444_p3, %p438_p0 }
  0x91   : > { %v233_v3 = vpop.permute.xlu0 %232 }
  0x92   : > { %v235_v5 = vmul.f32 %v233_v3, %v228_v4 }
  0x95   : > { %v240_v6 = vpop.permute.xlu0 %239 }
  0x96   : > { %v242_v7 = vadd.f32 %v240_v6, %v235_v5 }
  0x98   : > { %243 = vst [vmem:[%s211_s11] sm:$0xff] %v242_v7 }
  0x99   : > { %448 = shalt.err (!%p445_p5)
}
  0x9a   : > { %s449_s30 = scalar_lea.hbm %s258_s23, 128  ;;  %s453_s6 = scalar_lea.hbm %s643_s3, 256 }
  0x9b   : > { %p450_p6 = scmp.ne.s32.totalorder %s258_s23, %s449_s30  ;;  %p454_p10 = scmp.lt.s32.totalorder %s258_s23, %s643_s3 }
  0x9c   : > { %p455_p11 = scmp.lt.s32.totalorder %s453_s6, %s449_s30 }
  0x9d   : > { %p451_p7 = pnand %p450_p6, %p575_p4 }
  0x9e   : > { %p456_p12 = por %p455_p11, %p454_p10 }
  0x9f   : > { %p452_p9 = pneg %p451_p7 }
  0xa1   : > { %p457_p13 = pnand %p456_p12, %p452_p9 }
  0xa3   : > { %460 = shalt.err (!%p457_p13)
}
  0xa4   : > { %378 = dma.vmem_to_hbm [thread:$0]  (%p575_p4), %s261_s18, 128, %s258_s23, %s245_s26  }
  0xa5 PF: > { %p384_p0 = scmp.ge.s32.totalorder %s511_s17, 2  ;;  %s272_s9 = sand.u32 1, %s491_s12  }
  0xa6   : > { %s273_s10 = scalar_lea.sflag [#allocation3], %s272_s9 }
  0xa7   : > { %p381_p1 = pnand %p384_p0, %p582_p8 }
  0xa9   : > { %p382_p2 = pneg %p381_p1 }
  0xab   : > { %486 = dma.done.wait (%p382_p2), %s273_s10, 128  }
  0xac   : > { %488 = vsyncadd (%p382_p2), %s273_s10, 4294967168  ;;  %s16_s17 = sadd.s32 1, %s511_s17   ;;  %s646_s12 = smov %s495_s13 }
  0xad   : > { %p13_p3 = scmp.ge.s32.totalorder %s16_s17, 4   ;;  %s647_s13 = smov %s499_s14 }
  0xae   : > { %s648_s14 = smov %s588_s25  ;;  %s649_s15 = smov %s507_s16 }
  0xaf   : > { %s650_s16 = smov %s652_s20  ;;  %15 = sbr.rel (!%p13_p3) target bundleno = 4 (0x4), region = 73 }
  0xb4   :  { %278 = vsyncpa [#allocation3], 1 }
  0xb5   :  { %280 = vsyncpa [#allocation3 + $0x1], 1 }

</bundles_post_ra>
